<compile_context>
chip_gen: v6e
topology: v6e:2x2x1
jax: 0.10.0
libtpu: 0.0.40
codegen_flags: <defaults>
</compile_context>

<pallas_src>
import functools

import jax
import jax.numpy as jnp
from jax.experimental import pallas as pl
from jax.experimental.pallas import tpu as pltpu

_MiB = 1024 * 1024


def _round_up(v, m):
    return ((v + m - 1) // m) * m


def _largest_pow2_tile(total, cap):
    """Largest t = 128 * 2**k with t <= cap and total % t == 0 (total % 128 == 0)."""
    t = 128
    while t * 2 <= cap and total % (t * 2) == 0:
        t *= 2
    return t


def _gcn_kernel(g_ref, x_ref, w_ref, b_ref, o_ref, acc_ref, *,
                K, C, B, tm, tk, x_resident):
    # g_ref  : [K, tm, tk]            G tile (all K supports), compute dtype
    # x_ref  : [tk, B*C] (streamed) or [Np, B*C] (resident) graph signal
    # w_ref  : [K*C, Hp]              projection weight, Hp % 128 == 0
    # b_ref  : [1, Hp]                bias (padded)
    # o_ref  : [B, tm, Hp]            output row tile, lane dense
    # acc_ref: [K*tm, B*C]            f32 accumulator for this row tile
    j = pl.program_id(1)

    @pl.when(j == 0)
    def _init():
        acc_ref[...] = jnp.zeros_like(acc_ref)

    if x_resident:
        row0 = pl.multiple_of(j * tk, tk)
        x_blk = x_ref[pl.ds(row0, tk), :]
    else:
        x_blk = x_ref[...]

    # Single fused MXU call per step: [K*tm, tk] @ [tk, B*C].
    # Leading-dim merge (K, tm) -> K*tm is layout preserving (no data movement).
    g_flat = g_ref[...].reshape(K * tm, tk)
    acc_ref[...] += jnp.dot(g_flat, x_blk, preferred_element_type=jnp.float32)

    @pl.when(j == pl.num_programs(1) - 1)
    def _finalize():
        bias = b_ref[...]                                   # [1, Hp]
        for b in range(B):                                  # static -> unrolled
            y = bias
            for k in range(K):
                # Ref slices (no full-accumulator materialization, no concat).
                s_k = acc_ref[pl.ds(k * tm, tm), pl.ds(b * C, C)]   # [tm, C] f32
                w_k = w_ref[pl.ds(k * C, C), :]                     # [C, Hp]
                y = y + jnp.dot(s_k, w_k, preferred_element_type=jnp.float32)
            o_ref[b] = y.astype(o_ref.dtype)


def gcn_forward(G, x, W, b, *, node_tile_k=512, compute_dtype=jnp.bfloat16):
    """G: [K, N, N], x: [B, N, C], W: [K*C, H], b: [H]  ->  [B, N, H]."""
    K, N, _ = G.shape
    B, _, C = x.shape
    H = W.shape[-1]
    assert W.shape[0] == K * C

    # TODO(synk): if H < C it is cheaper to project first (Z_k = x @ W_k) and
    # accumulate G[k] @ Z_k; the current order is optimal for the common C <= H.

    out_dtype = x.dtype
    Hp = _round_up(H, 128)
    BC = B * C

    # ---- node padding & tile selection --------------------------------------
    if N <= 128:
        Np = _round_up(N, 16)        # 16: safe for bf16 sublane packing
        tm = tk = Np
    else:
        Np = _round_up(N, 128)
        tm_cap = 256 if Np >= 512 else Np // 2   # prefer >= 2 row tiles (v7x)
        tm = _largest_pow2_tile(Np, max(tm_cap, 128))
        tk = _largest_pow2_tile(Np, node_tile_k)
    nm, nk = Np // tm, Np // tk

    c_item = jnp.dtype(compute_dtype).itemsize
    p_item = jnp.dtype(W.dtype).itemsize
    o_item = jnp.dtype(out_dtype).itemsize

    # Keep x resident in VMEM (single HBM read) when it is small enough.
    x_resident = nk > 1 and Np * BC * c_item <= 4 * _MiB

    def footprint(tm_, tk_, xres):
        g_b = 2 * K * tm_ * tk_ * c_item               # double-buffered G tile
        x_b = 2 * (Np if xres else tk_) * BC * c_item  # x block(s)
        w_b = 2 * (K * C * Hp + Hp) * p_item           # W + bias
        o_b = 2 * B * tm_ * Hp * o_item                # output row tile
        a_b = K * tm_ * BC * 4                         # f32 accumulator scratch
        return g_b + x_b + w_b + o_b + a_b

    # Shrink until the footprint fits comfortably inside v7x's 64 MiB VMEM.
    budget = 40 * _MiB
    while footprint(tm, tk, x_resident) > budget:
        if x_resident:
            x_resident = False
        elif tm > 128:
            tm //= 2
        elif tk > 128:
            tk //= 2
        else:
            break
    nm, nk = Np // tm, Np // tk

    fp = footprint(tm, tk, x_resident)
    vmem_limit = int(min(max(fp * 5 // 4, 32 * _MiB), 48 * _MiB))
    if vmem_limit < fp + _MiB:                 # never request less than we use
        vmem_limit = int(fp + 4 * _MiB)

    # ---- layout plumbing (cheap XLA ops outside the kernel) -----------------
    pad_n = Np - N
    x_wide = jnp.transpose(x, (1, 0, 2)).reshape(N, BC)          # [N, B*C]
    if pad_n:
        x_wide = jnp.pad(x_wide, ((0, pad_n), (0, 0)))
        G = jnp.pad(G, ((0, 0), (0, pad_n), (0, pad_n)))
    x_wide = x_wide.astype(compute_dtype)                        # bf16: halve HBM traffic
    g_c = G.astype(compute_dtype)
    w_pad = jnp.pad(W, ((0, 0), (0, Hp - H)))                    # [K*C, Hp]
    b_pad = jnp.pad(b, (0, Hp - H)).reshape(1, Hp)               # [1, Hp]

    # ---- advisory cost estimate ---------------------------------------------
    flops = 2 * K * Np * Np * BC + 2 * B * Np * K * C * Hp
    x_passes = 1 if (x_resident or nm == 1) else nm
    bytes_accessed = int(K * Np * Np * c_item
                         + x_passes * Np * BC * c_item
                         + (K * C * Hp + Hp) * p_item
                         + B * Np * Hp * o_item)

    kernel = functools.partial(_gcn_kernel, K=K, C=C, B=B, tm=tm, tk=tk,
                               x_resident=x_resident)

    x_spec = (pl.BlockSpec((Np, BC), lambda i, j: (0, 0)) if x_resident
              else pl.BlockSpec((tk, BC), lambda i, j: (j, 0)))

    out_pad = pl.pallas_call(
        kernel,
        out_shape=jax.ShapeDtypeStruct((B, Np, Hp), out_dtype),
        grid_spec=pltpu.PrefetchScalarGridSpec(
            num_scalar_prefetch=0,
            grid=(nm, nk),                        # (row tiles, contraction)
            in_specs=[
                pl.BlockSpec((K, tm, tk), lambda i, j: (0, i, j)),   # G tile
                x_spec,                                              # x (batch in lanes)
                pl.BlockSpec((K * C, Hp), lambda i, j: (0, 0)),      # W (grid-invariant)
                pl.BlockSpec((1, Hp), lambda i, j: (0, 0)),          # bias
            ],
            out_specs=pl.BlockSpec((B, tm, Hp), lambda i, j: (0, i, 0)),
            scratch_shapes=[pltpu.VMEM((K * tm, BC), jnp.float32)],
        ),
        compiler_params=pltpu.CompilerParams(
            dimension_semantics=("parallel", "arbitrary"),
            vmem_limit_bytes=vmem_limit,
        ),
        cost_estimate=pl.CostEstimate(
            flops=flops, transcendentals=0, bytes_accessed=bytes_accessed),
    )(g_c, x_wide, w_pad, b_pad)

    return out_pad[:, :N, :H]


if __name__ == "__main__":
    # Small shapes consistent with the module's forward.
    B, N, C, K, H = 2, 16, 8, 3, 32

    key = jax.random.PRNGKey(0)
    kg, kx, kw = jax.random.split(key, 3)

    G = jax.random.normal(kg, (K, N, N), dtype=jnp.float32)
    x = jax.random.normal(kx, (B, N, C), dtype=jnp.float32)

    # Deterministic params matching nn.init.xavier_normal_ / constant_(0).
    fan_in, fan_out = K * C, H
    xavier_std = (2.0 / (fan_in + fan_out)) ** 0.5
    W = jax.random.normal(kw, (K * C, H), dtype=jnp.float32) * xavier_std
    b = jnp.zeros((H,), dtype=jnp.float32)

    out = gcn_forward(G, x, W, b)
    out = jax.block_until_ready(out)
    assert out.shape == (B, N, H)

    # Pure-JAX reference (same math as the PyTorch module), applying the same
    # bf16 rounding to G and x that the kernel applies (f32 accumulation).
    Gc = G.astype(jnp.bfloat16).astype(jnp.float32)
    xc = x.astype(jnp.bfloat16).astype(jnp.float32)
    supports = [jnp.einsum("ij,bjp->bip", Gc[k], xc,
                           precision=jax.lax.Precision.HIGHEST)
                for k in range(K)]
    support_cat = jnp.concatenate(supports, axis=-1)
    ref = jnp.einsum("bip,pq->biq", support_cat, W,
                     precision=jax.lax.Precision.HIGHEST) + b

    assert jnp.allclose(out, ref, atol=2e-2, rtol=2e-2), (
        float(jnp.max(jnp.abs(out - ref))))
    print("KERNEL_OK")
</pallas_src>

<mosaic_0001>
module attributes {stable_mosaic.version = 11 : i64} {
  func.func @_gcn_kernel(%arg0: i32, %arg1: i32, %arg2: memref<3x16x16xbf16, #tpu.memory_space<vmem>>, %arg3: memref<16x16xbf16, #tpu.memory_space<vmem>>, %arg4: memref<24x128xf32, #tpu.memory_space<vmem>>, %arg5: memref<1x128xf32, #tpu.memory_space<vmem>>, %arg6: memref<2x16x128xf32, #tpu.memory_space<vmem>>, %arg7: memref<48x16xf32, #tpu.memory_space<vmem>>) attributes {dimension_semantics = [#tpu.dimension_semantics<parallel>, #tpu.dimension_semantics<arbitrary>], iteration_bounds = array<i64: 1, 1>, scalar_prefetch = 0 : i64, scratch_operands = 1 : i64, tpu.core_type = #tpu.core_type<tc>, window_params = [{transform_indices = @transform_0, window_bounds = array<i64: 3, 16, 16>}, {transform_indices = @transform_1, window_bounds = array<i64: 16, 16>}, {pipeline_mode = #tpu.pipeline_mode<synchronous>, transform_indices = @transform_2, window_bounds = array<i64: 24, 128>}, {pipeline_mode = #tpu.pipeline_mode<synchronous>, transform_indices = @transform_3, window_bounds = array<i64: 1, 128>}, {transform_indices = @transform_4, window_bounds = array<i64: 2, 16, 128>}]} {
    %c0_i32 = arith.constant 0 : i32
    %0 = arith.cmpi eq, %arg1, %c0_i32 : i32
    %1 = arith.extui %0 : i1 to i32
    %c0_i32_0 = arith.constant 0 : i32
    %2 = arith.cmpi ne, %1, %c0_i32_0 : i32
    scf.if %2 {
      %cst_11 = arith.constant 0.000000e+00 : f32
      %13 = vector.broadcast %cst_11 : f32 to vector<48x16xf32>
      %c0_12 = arith.constant 0 : index
      %c0_13 = arith.constant 0 : index
      %14 = vector.load %arg7[%c0_12, %c0_13] : memref<48x16xf32, #tpu.memory_space<vmem>>, vector<48x16xf32>
      tpu.vector_store %arg7[%c0_12, %c0_13], %13 {strides = array<i32>} : memref<48x16xf32, #tpu.memory_space<vmem>>, vector<48x16xf32>,
    } else {
    }
    %c0 = arith.constant 0 : index
    %c0_1 = arith.constant 0 : index
    %3 = vector.load %arg3[%c0, %c0_1] : memref<16x16xbf16, #tpu.memory_space<vmem>>, vector<16x16xbf16>
    %c0_2 = arith.constant 0 : index
    %c0_3 = arith.constant 0 : index
    %c0_4 = arith.constant 0 : index
    %4 = vector.load %arg2[%c0_2, %c0_3, %c0_4] : memref<3x16x16xbf16, #tpu.memory_space<vmem>>, vector<3x16x16xbf16>
    %5 = vector.shape_cast %4 : vector<3x16x16xbf16> to vector<48x16xbf16>
    %c0_5 = arith.constant 0 : index
    %c0_6 = arith.constant 0 : index
    %6 = vector.load %arg7[%c0_5, %c0_6] : memref<48x16xf32, #tpu.memory_space<vmem>>, vector<48x16xf32>
    %cst = arith.constant dense<0.000000e+00> : vector<48x16xf32>
    %7 = tpu.matmul %5, %3, %cst {dimension_numbers = #tpu.dot_dimension_numbers<[1], [0], [0], [1], [0, 0, 1, 1], [], []>} : vector<48x16xbf16>, vector<16x16xbf16>, vector<48x16xf32> -> vector<48x16xf32>
    %8 = arith.addf %6, %7 : vector<48x16xf32>
    %c0_7 = arith.constant 0 : index
    %c0_8 = arith.constant 0 : index
    %9 = vector.load %arg7[%c0_7, %c0_8] : memref<48x16xf32, #tpu.memory_space<vmem>>, vector<48x16xf32>
    tpu.vector_store %arg7[%c0_7, %c0_8], %8 {strides = array<i32>} : memref<48x16xf32, #tpu.memory_space<vmem>>, vector<48x16xf32>,
    %c0_i32_9 = arith.constant 0 : i32
    %10 = arith.cmpi eq, %arg1, %c0_i32_9 : i32
    %11 = arith.extui %10 : i1 to i32
    %c0_i32_10 = arith.constant 0 : i32
    %12 = arith.cmpi ne, %11, %c0_i32_10 : i32
    scf.if %12 {
      %c0_11 = arith.constant 0 : index
      %c0_12 = arith.constant 0 : index
      %13 = vector.load %arg5[%c0_11, %c0_12] : memref<1x128xf32, #tpu.memory_space<vmem>>, vector<1x128xf32>
      %c0_13 = arith.constant 0 : index
      %c0_14 = arith.constant 0 : index
      %14 = vector.load %arg7[%c0_13, %c0_14] : memref<48x16xf32, #tpu.memory_space<vmem>>, vector<16x8xf32>
      %c0_15 = arith.constant 0 : index
      %c0_16 = arith.constant 0 : index
      %15 = vector.load %arg4[%c0_15, %c0_16] : memref<24x128xf32, #tpu.memory_space<vmem>>, vector<8x128xf32>
      %cst_17 = arith.constant dense<0.000000e+00> : vector<16x128xf32>
      %16 = tpu.matmul %14, %15, %cst_17 {dimension_numbers = #tpu.dot_dimension_numbers<[1], [0], [0], [1], [0, 0, 1, 1], [], []>} : vector<16x8xf32>, vector<8x128xf32>, vector<16x128xf32> -> vector<16x128xf32>
      %17 = vector.broadcast %13 : vector<1x128xf32> to vector<16x128xf32>
      %18 = arith.addf %17, %16 : vector<16x128xf32>
      %c16 = arith.constant 16 : index
      %c0_18 = arith.constant 0 : index
      %19 = vector.load %arg7[%c16, %c0_18] : memref<48x16xf32, #tpu.memory_space<vmem>>, vector<16x8xf32>
      %c8 = arith.constant 8 : index
      %c0_19 = arith.constant 0 : index
      %20 = vector.load %arg4[%c8, %c0_19] : memref<24x128xf32, #tpu.memory_space<vmem>>, vector<8x128xf32>
      %cst_20 = arith.constant dense<0.000000e+00> : vector<16x128xf32>
      %21 = tpu.matmul %19, %20, %cst_20 {dimension_numbers = #tpu.dot_dimension_numbers<[1], [0], [0], [1], [0, 0, 1, 1], [], []>} : vector<16x8xf32>, vector<8x128xf32>, vector<16x128xf32> -> vector<16x128xf32>
      %22 = arith.addf %18, %21 : vector<16x128xf32>
      %c32 = arith.constant 32 : index
      %c0_21 = arith.constant 0 : index
      %23 = vector.load %arg7[%c32, %c0_21] : memref<48x16xf32, #tpu.memory_space<vmem>>, vector<16x8xf32>
      %c16_22 = arith.constant 16 : index
      %c0_23 = arith.constant 0 : index
      %24 = vector.load %arg4[%c16_22, %c0_23] : memref<24x128xf32, #tpu.memory_space<vmem>>, vector<8x128xf32>
      %cst_24 = arith.constant dense<0.000000e+00> : vector<16x128xf32>
      %25 = tpu.matmul %23, %24, %cst_24 {dimension_numbers = #tpu.dot_dimension_numbers<[1], [0], [0], [1], [0, 0, 1, 1], [], []>} : vector<16x8xf32>, vector<8x128xf32>, vector<16x128xf32> -> vector<16x128xf32>
      %26 = arith.addf %22, %25 : vector<16x128xf32>
      %c0_25 = arith.constant 0 : index
      %c0_26 = arith.constant 0 : index
      %c0_27 = arith.constant 0 : index
      %27 = vector.load %arg6[%c0_25, %c0_26, %c0_27] : memref<2x16x128xf32, #tpu.memory_space<vmem>>, vector<1x16x128xf32>
      %28 = vector.shape_cast %27 : vector<1x16x128xf32> to vector<16x128xf32>
      %29 = vector.shape_cast %26 : vector<16x128xf32> to vector<1x16x128xf32>
      tpu.vector_store %arg6[%c0_25, %c0_26, %c0_27], %29 {strides = array<i32>} : memref<2x16x128xf32, #tpu.memory_space<vmem>>, vector<1x16x128xf32>,
      %c0_28 = arith.constant 0 : index
      %c8_29 = arith.constant 8 : index
      %30 = vector.load %arg7[%c0_28, %c8_29] : memref<48x16xf32, #tpu.memory_space<vmem>>, vector<16x8xf32>
      %c0_30 = arith.constant 0 : index
      %c0_31 = arith.constant 0 : index
      %31 = vector.load %arg4[%c0_30, %c0_31] : memref<24x128xf32, #tpu.memory_space<vmem>>, vector<8x128xf32>
      %cst_32 = arith.constant dense<0.000000e+00> : vector<16x128xf32>
      %32 = tpu.matmul %30, %31, %cst_32 {dimension_numbers = #tpu.dot_dimension_numbers<[1], [0], [0], [1], [0, 0, 1, 1], [], []>} : vector<16x8xf32>, vector<8x128xf32>, vector<16x128xf32> -> vector<16x128xf32>
      %33 = vector.broadcast %13 : vector<1x128xf32> to vector<16x128xf32>
      %34 = arith.addf %33, %32 : vector<16x128xf32>
      %c16_33 = arith.constant 16 : index
      %c8_34 = arith.constant 8 : index
      %35 = vector.load %arg7[%c16_33, %c8_34] : memref<48x16xf32, #tpu.memory_space<vmem>>, vector<16x8xf32>
      %c8_35 = arith.constant 8 : index
      %c0_36 = arith.constant 0 : index
      %36 = vector.load %arg4[%c8_35, %c0_36] : memref<24x128xf32, #tpu.memory_space<vmem>>, vector<8x128xf32>
      %cst_37 = arith.constant dense<0.000000e+00> : vector<16x128xf32>
      %37 = tpu.matmul %35, %36, %cst_37 {dimension_numbers = #tpu.dot_dimension_numbers<[1], [0], [0], [1], [0, 0, 1, 1], [], []>} : vector<16x8xf32>, vector<8x128xf32>, vector<16x128xf32> -> vector<16x128xf32>
      %38 = arith.addf %34, %37 : vector<16x128xf32>
      %c32_38 = arith.constant 32 : index
      %c8_39 = arith.constant 8 : index
      %39 = vector.load %arg7[%c32_38, %c8_39] : memref<48x16xf32, #tpu.memory_space<vmem>>, vector<16x8xf32>
      %c16_40 = arith.constant 16 : index
      %c0_41 = arith.constant 0 : index
      %40 = vector.load %arg4[%c16_40, %c0_41] : memref<24x128xf32, #tpu.memory_space<vmem>>, vector<8x128xf32>
      %cst_42 = arith.constant dense<0.000000e+00> : vector<16x128xf32>
      %41 = tpu.matmul %39, %40, %cst_42 {dimension_numbers = #tpu.dot_dimension_numbers<[1], [0], [0], [1], [0, 0, 1, 1], [], []>} : vector<16x8xf32>, vector<8x128xf32>, vector<16x128xf32> -> vector<16x128xf32>
      %42 = arith.addf %38, %41 : vector<16x128xf32>
      %c1 = arith.constant 1 : index
      %c0_43 = arith.constant 0 : index
      %c0_44 = arith.constant 0 : index
      %43 = vector.load %arg6[%c1, %c0_43, %c0_44] : memref<2x16x128xf32, #tpu.memory_space<vmem>>, vector<1x16x128xf32>
      %44 = vector.shape_cast %43 : vector<1x16x128xf32> to vector<16x128xf32>
      %45 = vector.shape_cast %42 : vector<16x128xf32> to vector<1x16x128xf32>
      tpu.vector_store %arg6[%c1, %c0_43, %c0_44], %45 {strides = array<i32>} : memref<2x16x128xf32, #tpu.memory_space<vmem>>, vector<1x16x128xf32>,
    } else {
    }
    return
  }
  func.func @transform_0(%arg0: i32, %arg1: i32) -> (i32, i32, i32) {
    %c0_i32 = arith.constant 0 : i32
    %c0_i32_0 = arith.constant 0 : i32
    return %c0_i32, %arg0, %arg1 : i32, i32, i32
  }
  func.func @transform_1(%arg0: i32, %arg1: i32) -> (i32, i32) {
    %c0_i32 = arith.constant 0 : i32
    %c0_i32_0 = arith.constant 0 : i32
    return %arg1, %c0_i32 : i32, i32
  }
  func.func @transform_2(%arg0: i32, %arg1: i32) -> (i32, i32) {
    %c0_i32 = arith.constant 0 : i32
    %c0_i32_0 = arith.constant 0 : i32
    %c0_i32_1 = arith.constant 0 : i32
    return %c0_i32, %c0_i32_0 : i32, i32
  }
  func.func @transform_3(%arg0: i32, %arg1: i32) -> (i32, i32) {
    %c0_i32 = arith.constant 0 : i32
    %c0_i32_0 = arith.constant 0 : i32
    %c0_i32_1 = arith.constant 0 : i32
    return %c0_i32, %c0_i32_0 : i32, i32
  }
  func.func @transform_4(%arg0: i32, %arg1: i32) -> (i32, i32, i32) {
    %c0_i32 = arith.constant 0 : i32
    %c0_i32_0 = arith.constant 0 : i32
    %c0_i32_1 = arith.constant 0 : i32
    return %c0_i32, %arg0, %c0_i32_0 : i32, i32, i32
  }
}

</mosaic_0001>

<bundles_post_ra>
// kernel: tpu_custom_call.1
= control target key start
LH: loop header
LB: loop body
LE: loop exit
PB: predicated region body
PF: predicated region fallthrough
CT: control target
= control target key end

     0   :  { %9 = vsyncpa [#allocation4], 0  ;;  %s1030_s0 = inlined_call_operand.hbm [shape: bf16[3,16,16], index: 0, kind: input, shape index: {}]   ;;  %s1031_s1 = inlined_call_operand.hbm [shape: bf16[16,16], index: 1, kind: input, shape index: {}]   ;;  %s1032_s2 = inlined_call_operand.hbm [shape: f32[24,128], index: 2, kind: input, shape index: {}]   ;;  %s1033_s3 = inlined_call_operand.vmem [shape: f32[1,128], index: 3, kind: input, shape index: {}]   ;;  %s1034_s4 = inlined_call_operand.hbm [shape: f32[2,16,128], index: 4, kind: output, shape index: {}]  }
   0x1   :  { %10 = vsyncpa [#allocation7], 0 }
   0x2   :  { %11 = vsyncpa [#allocation5], 0  ;;  %s934_s15 = smov [#allocation6]   ;;  %s935_s17 = smov [#allocation3]  }
   0x3   :  { %s29_s16 = sshll.u32 %s934_s15, 4  ;;  %s17_s18 = sshll.u32 %s935_s17, 4  ;;  %s30_s16 = int_to_ptr.vmem [resolvable:$true] %s29_s16  ;;  %s18_s18 = int_to_ptr.vmem [resolvable:$true] %s17_s18 }
   0x4   :  { %s856_s19 = scalar_lea.vmem %s30_s16, 128  ;;  %p861_p1 = scmp.lt.s32.totalorder %s30_s16, %s30_s16 }
   0x5   :  { %p857_p0 = scmp.ne.s32.totalorder %s30_s16, %s856_s19  ;;  %p862_p2 = scmp.lt.s32.totalorder %s856_s19, %s856_s19 }
   0x7   :  { %p863_p3 = por %p862_p2, %p861_p1 }
   0x9   :  { %p864_p4 = pnand %p863_p3, %p857_p0 }
   0xb   :  { %867 = shalt.err (!%p864_p4)
}
   0xc   :  { %s936_s20 = smov 64   ;;  %s937_s21 = smov 4  }
   0xd   :  { %35 = dma.hbm_to_vmem [thread:$0]  %s1031_s1, 128, %s30_s16, [#allocation7], %s936_s20, %s936_s20, %s937_s21  }
   0xe   :  { %s876_s24 = scalar_lea.vmem %s18_s18, 384  ;;  %p881_p6 = scmp.lt.s32.totalorder %s18_s18, %s18_s18 }
   0xf   :  { %p877_p5 = scmp.ne.s32.totalorder %s18_s18, %s876_s24  ;;  %p882_p7 = scmp.lt.s32.totalorder %s876_s24, %s876_s24 }
  0x11   :  { %p883_p8 = por %p882_p7, %p881_p6 }
  0x13   :  { %p884_p9 = pnand %p883_p8, %p877_p5 }
  0x15   :  { %887 = shalt.err (!%p884_p9)
}
  0x16   :  { %23 = dma.hbm_to_vmem [thread:$0]  %s1030_s0, 384, %s18_s18, [#allocation4], %s936_s20, %s936_s20, %s937_s21  }
  0x17   :  { %s938_s27 = smov [#allocation8]  }
  0x18   :  { %s41_s28 = sshll.u32 %s938_s27, 4  ;;  %s42_s28 = int_to_ptr.vmem [resolvable:$true] %s41_s28 }
  0x19   :  { %s896_s29 = scalar_lea.vmem %s42_s28, 384  ;;  %p901_p11 = scmp.lt.s32.totalorder %s42_s28, %s42_s28 }
  0x1a   :  { %p897_p10 = scmp.ne.s32.totalorder %s42_s28, %s896_s29  ;;  %p902_p12 = scmp.lt.s32.totalorder %s896_s29, %s896_s29 }
  0x1c   :  { %p903_p13 = por %p902_p12, %p901_p11 }
  0x1e   :  { %p904_p0 = pnand %p903_p13, %p897_p10 }
  0x20   :  { %907 = shalt.err (!%p904_p0)
}
  0x21   :  { %s939_s1 = smov 128   ;;  %s940_s30 = smov 8  }
  0x22   :  { %47 = dma.hbm_to_vmem [thread:$0]  %s1032_s2, 384, %s42_s28, [#allocation7], %s939_s1, %s939_s1, %s940_s30  }
  0x23   :  { %928 = dma.done.wait [#allocation4], 384  }
  0x24   :  { %929 = vsyncadd [#allocation4], 4294966912 }
  0x25   :  { %930 = dma.done.wait [#allocation7], 512  }
  0x26   :  { %931 = vsyncadd [#allocation7], 4294966784  ;;  %vm64_vm0 = vcmask 130048   ;;  %v941_v0 = vmov 0.0   ;;  %vm942_vm1 = vmmov 0   ;;  %v844_v1 = vld [vmem:[#allocation6] sm:$0xff]  }
  0x27   :  { %789 = vmatprep.subr.bf16.mxu0 %v941_v0  ;;  %791 = vmatprep.mubr.msk.bf16.mxu0 %vm942_vm1, %v941_v0  ;;  %65 = vst.msk [vmem:[#allocation2] sm:$0xff] %vm64_vm0, %v941_v0  ;;  %66 = vst.msk [vmem:[#allocation2 + $0x8] sm:$0xff] %vm64_vm0, %v941_v0  ;;  %v845_v2 = vld [vmem:[#allocation3] sm:$0xff]   ;;  %v846_v3 = vld [vmem:[#allocation3 + $0x8] sm:$0xff]   ;;  %vm192_vm2 = vcmask 64512   ;;  %s943_s0 = smov 120  }
  0x28   :  { %67 = vst.msk [vmem:[#allocation2 + $0x10] sm:$0xff] %vm64_vm0, %v941_v0  ;;  %68 = vst.msk [vmem:[#allocation2 + $0x18] sm:$0xff] %vm64_vm0, %v941_v0  ;;  %790 = vmatpush3.bf16.msra.mxu0 %v844_v1  ;;  %v847_v4 = vld [vmem:[#allocation3 + $0x10] sm:$0xff]   ;;  %v191_v5 = vld [vmem:[#allocation8] sm:$0xff] }
  0x29   :  { %69 = vst.msk [vmem:[#allocation2 + $0x20] sm:$0xff] %vm64_vm0, %v941_v0  ;;  %70 = vst.msk [vmem:[#allocation2 + $0x28] sm:$0xff] %vm64_vm0, %v941_v0  ;;  %803 = vmatprep.subr.mxu1 %v191_v5  ;;  %v991_v6 = vld [vmem:[#allocation8 + $0x8] sm:$0xff]  ;;  %v370_v26 = vld [vmem:[#allocation8 + $0x10] sm:$0xff] }
  0x2a   :  { %804 = vmatpush3.msra.mxu1 %v191_v5  ;;  %v756_v46 = vld [vmem:[%s1033_s3] ss:$0 sm:$0xff]  ;;  %s944_s3 = smov [#allocation9]  }
  0x2b   :  { %792 = vmatmul.mubr.msk.bf16.vlgmr.msra.gmra.mxu0 %vm64_vm0, %v845_v2  ;;  %808 = vmatprep.subr.mxu1 %v991_v6  ;;  %s734_s8 = sshll.u32 %s944_s3, 4  ;;  %s735_s8 = int_to_ptr.vmem [resolvable:$true] %s734_s8 }
  0x2c   :  { %795 = vmatprep.mubr.msk.bf16.mxu0 %vm942_vm1, %v941_v0  ;;  %s908_s9 = scalar_lea.vmem %s735_s8, 512  ;;  %p913_p2 = scmp.lt.s32.totalorder %s735_s8, %s735_s8 }
  0x2d   :  { %p909_p1 = scmp.ne.s32.totalorder %s735_s8, %s908_s9  ;;  %p914_p3 = scmp.lt.s32.totalorder %s908_s9, %s908_s9 }
  0x2e   :  { %v79_v7 = vld [vmem:[#allocation2] sm:$0xff]  ;;  %v80_v11 = vld [vmem:[#allocation2 + $0x8] sm:$0xff] }
  0x2f   :  { %v81_v15 = vld [vmem:[#allocation2 + $0x10] sm:$0xff]  ;;  %v82_v20 = vld [vmem:[#allocation2 + $0x18] sm:$0xff]  ;;  %p915_p4 = por %p914_p3, %p913_p2 }
  0x30   :  { %v83_v25 = vld [vmem:[#allocation2 + $0x20] sm:$0xff]  ;;  %v84_v31 = vld [vmem:[#allocation2 + $0x28] sm:$0xff] }
  0x31   :  { %p916_p5 = pnand %p915_p4, %p909_p1 }
  0x33   :  { %796 = vmatmul.mubr.msk.bf16.gmra.mxu0 %vm64_vm0, %v846_v3 }
  0x34   :  { %799 = vmatprep.mubr.msk.bf16.mxu0 %vm942_vm1, %v941_v0 }
  0x3b   :  { %800 = vmatmul.mubr.msk.bf16.gmra.mxu0 %vm64_vm0, %v847_v4 }
  0xeb   :  { %v150_v8 = vpop.f32.mrf.mxu0 }
  0xec   :  { %v173_v9 = vadd.f32 %v150_v8, %v79_v7 }
  0xed   :  { %v793_v10 = vpop.f32.mrf.mxu0 }
  0xee   :  { %179 = vst.msk [vmem:[#allocation2] sm:$0xff] %vm64_vm0, %v173_v9 }
  0xef   :  { %v153_v12 = vpop.f32.mrf.mxu0 }
  0xf0   :  { %v174_v13 = vadd.f32 %v153_v12, %v80_v11 }
  0xf1   :  { %v794_v14 = vpop.f32.mrf.mxu0 }
  0xf2   :  { %180 = vst.msk [vmem:[#allocation2 + $0x8] sm:$0xff] %vm64_vm0, %v174_v13 }
  0xf3   :  { %v158_v16 = vpop.f32.mrf.mxu0 }
  0xf4   :  { %v175_v17 = vadd.f32 %v158_v16, %v81_v15 }
  0xf5   :  { %v797_v18 = vpop.f32.mrf.mxu0  ;;  %v456_v19 = vld [vmem:[#allocation2] sm:$0xff] }
  0xf6   :  { %181 = vst.msk [vmem:[#allocation2 + $0x10] sm:$0xff] %vm64_vm0, %v175_v17  ;;  %461 = vrot.lane.b32.xlu0 %v456_v19, %s943_s0  ;;  %805 = vmatprep.mubr.msk.f32.mxu1 %vm192_vm2, %v456_v19 }
  0xf7   :  { %v161_v21 = vpop.f32.mrf.mxu0 }
  0xf8   :  { %v176_v22 = vadd.f32 %v161_v21, %v82_v20 }
  0xf9   :  { %v798_v23 = vpop.f32.mrf.mxu0  ;;  %v457_v24 = vld [vmem:[#allocation2 + $0x8] sm:$0xff] }
  0xfa   :  { %182 = vst.msk [vmem:[#allocation2 + $0x18] sm:$0xff] %vm64_vm0, %v176_v22  ;;  %463 = vrot.lane.b32.xlu0 %v457_v24, %s943_s0  ;;  %806 = vmatmul.mubr.msk.f32.vlgmr.msra.gmra.mxu1 %vm192_vm2, %v457_v24 }
  0xfb   :  { %v166_v27 = vpop.f32.mrf.mxu0  ;;  %809 = vmatpush3.msra.mxu1 %v991_v6 }
  0xfc   :  { %v177_v28 = vadd.f32 %v166_v27, %v83_v25  ;;  %813 = vmatprep.subr.mxu1 %v370_v26 }
  0xfd   :  { %v801_v29 = vpop.f32.mrf.mxu0  ;;  %v546_v30 = vld [vmem:[#allocation2 + $0x10] sm:$0xff] }
  0xfe   :  { %183 = vst.msk [vmem:[#allocation2 + $0x20] sm:$0xff] %vm64_vm0, %v177_v28  ;;  %551 = vrot.lane.b32.xlu1 %v546_v30, %s943_s0  ;;  %810 = vmatprep.mubr.msk.f32.mxu1 %vm192_vm2, %v546_v30 }
  0xff   :  { %v169_v32 = vpop.f32.mrf.mxu0 }
 0x100   :  { %v178_v33 = vadd.f32 %v169_v32, %v84_v31 }
 0x101   :  { %v802_v34 = vpop.f32.mrf.mxu0  ;;  %v547_v35 = vld [vmem:[#allocation2 + $0x18] sm:$0xff] }
 0x102   :  { %184 = vst.msk [vmem:[#allocation2 + $0x28] sm:$0xff] %vm64_vm0, %v178_v33  ;;  %553 = vrot.lane.b32.xlu1 %v547_v35, %s943_s0  ;;  %811 = vmatmul.mubr.msk.f32.vlgmr.msra.gmra.mxu1 %vm192_vm2, %v547_v35 }
 0x103   :  { %814 = vmatpush3.msra.mxu1 %v370_v26 }
 0x104   :  { %818 = vmatprep.subr.mxu1 %v191_v5 }
 0x105   :  { %v636_v36 = vld [vmem:[#allocation2 + $0x20] sm:$0xff] }
 0x106   :  { %641 = vrot.lane.b32.xlu0 %v636_v36, %s943_s0  ;;  %815 = vmatprep.mubr.msk.f32.mxu1 %vm192_vm2, %v636_v36 }
 0x109   :  { %v637_v37 = vld [vmem:[#allocation2 + $0x28] sm:$0xff] }
 0x10a   :  { %643 = vrot.lane.b32.xlu1 %v637_v37, %s943_s0  ;;  %816 = vmatmul.mubr.msk.f32.vlgmr.msra.gmra.mxu1 %vm192_vm2, %v637_v37 }
 0x10b   :  { %819 = vmatpush3.msra.mxu1 %v191_v5 }
 0x10c   :  { %823 = vmatprep.subr.mxu1 %v991_v6 }
 0x168   :  { %v462_v38 = vpop.permute.xlu0 %461 }
 0x169   :  { %820 = vmatprep.mubr.msk.f32.mxu1 %vm192_vm2, %v462_v38 }
 0x16c   :  { %v464_v39 = vpop.permute.xlu0 %463 }
 0x16d   :  { %821 = vmatmul.mubr.msk.f32.vlgmr.msra.gmra.mxu1 %vm192_vm2, %v464_v39 }
 0x16e   :  { %824 = vmatpush3.msra.mxu1 %v991_v6 }
 0x16f   :  { %828 = vmatprep.subr.mxu1 %v370_v26 }
 0x170   :  { %v552_v40 = vpop.permute.xlu1 %551 }
 0x171   :  { %825 = vmatprep.mubr.msk.f32.mxu1 %vm192_vm2, %v552_v40 }
 0x174   :  { %v554_v41 = vpop.permute.xlu1 %553 }
 0x175   :  { %826 = vmatmul.mubr.msk.f32.vlgmr.msra.gmra.mxu1 %vm192_vm2, %v554_v41 }
 0x176   :  { %829 = vmatpush3.msra.mxu1 %v370_v26 }
 0x178   :  { %v642_v42 = vpop.permute.xlu0 %641 }
 0x179   :  { %830 = vmatprep.mubr.msk.f32.mxu1 %vm192_vm2, %v642_v42 }
 0x17c   :  { %v644_v43 = vpop.permute.xlu1 %643 }
 0x17d   :  { %831 = vmatmul.mubr.msk.f32.vlgmr.msra.gmra.mxu1 %vm192_vm2, %v644_v43 }
 0x1ba   :  { %v807_v44 = vpop.f32.mrf.mxu1 }
 0x1bb   :  { %v281_v48 = vadd.f32 %v807_v44, %v756_v46 }
 0x1bc   :  { %v265_v45 = vpop.f32.mrf.mxu1 }
 0x1bd   :  { %v280_v50 = vadd.f32 %v756_v46, %v265_v45 }
 0x1c2   :  { %v812_v47 = vpop.f32.mrf.mxu1 }
 0x1c3   :  { %v367_v51 = vadd.f32 %v812_v47, %v281_v48 }
 0x1c4   :  { %v357_v49 = vpop.f32.mrf.mxu1 }
 0x1c5   :  { %v366_v53 = vadd.f32 %v357_v49, %v280_v50 }
 0x1ca   :  { %v817_v52 = vpop.f32.mrf.mxu1 }
 0x1cb   :  { %v453_v54 = vadd.f32 %v817_v52, %v367_v51 }
 0x1cc   :  { %v443_v55 = vpop.f32.mrf.mxu1 }
 0x1cd   :  { %455 = vst [vmem:[#allocation9 + $0x8] sm:$0xff] %v453_v54  ;;  %v452_v56 = vadd.f32 %v443_v55, %v366_v53 }
 0x1cf   :  { %454 = vst [vmem:[#allocation9] sm:$0xff] %v452_v56 }
 0x22d   :  { %v822_v57 = vpop.f32.mrf.mxu1 }
 0x22e   :  { %v545_v60 = vadd.f32 %v822_v57, %v756_v46 }
 0x22f   :  { %v535_v58 = vpop.f32.mrf.mxu1 }
 0x230   :  { %v544_v62 = vadd.f32 %v756_v46, %v535_v58 }
 0x235   :  { %v827_v59 = vpop.f32.mrf.mxu1 }
 0x236   :  { %v635_v63 = vadd.f32 %v827_v59, %v545_v60 }
 0x237   :  { %v625_v61 = vpop.f32.mrf.mxu1 }
 0x238   :  { %v634_v1 = vadd.f32 %v625_v61, %v544_v62 }
 0x23d   :  { %v832_v0 = vpop.f32.mrf.mxu1 }
 0x23e   :  { %v725_v2 = vadd.f32 %v832_v0, %v635_v63 }
 0x23f   :  { %v715_v3 = vpop.f32.mrf.mxu1 }
 0x240   :  { %728 = vst [vmem:[#allocation9 + $0x18] sm:$0xff] %v725_v2  ;;  %v724_v4 = vadd.f32 %v715_v3, %v634_v1 }
 0x242   :  { %727 = vst [vmem:[#allocation9 + $0x10] sm:$0xff] %v724_v4 }
 0x243   :  { %919 = shalt.err (!%p916_p5)
}
 0x244   :  { %740 = dma.vmem_to_hbm [thread:$0]  %s735_s8, 512, %s1034_s4, [#allocation5], %s939_s1, %s939_s1, %s940_s30  }
 0x245   :  { %932 = dma.done.wait [#allocation5], 512  }
 0x246   :  { %933 = vsyncadd [#allocation5], 4294966784 }
 0x247   :  { %744 = vsyncpa [#allocation4], 1 }
 0x248   :  { %745 = vsyncpa [#allocation7], 1 }
 0x249   :  { %746 = vsyncpa [#allocation5], 1 }

</bundles_post_ra>
